<compile_context>
chip_gen: v7x
topology: tpu7x:2x2x1
jax: 0.10.0
libtpu: 0.0.40
codegen_flags: <defaults>
</compile_context>

<pallas_src>
import jax
import jax.numpy as jnp
from jax.experimental import pallas as pl
from jax.experimental.pallas import tpu as pltpu


def _relu_kernel(x_ref, o_ref):
    # Pure VPU elementwise max on the whole VMEM tile.
    o_ref[...] = jnp.maximum(x_ref[...], jnp.zeros((), x_ref.dtype))


def _relu_pallas_2d(x2d: jax.Array, block_rows: int) -> jax.Array:
    rows, lanes = x2d.shape
    grid = (pl.cdiv(rows, block_rows),)
    return pl.pallas_call(
        _relu_kernel,
        out_shape=jax.ShapeDtypeStruct((rows, lanes), x2d.dtype),
        grid_spec=pltpu.PrefetchScalarGridSpec(
            num_scalar_prefetch=0,
            grid=grid,
            in_specs=[pl.BlockSpec((block_rows, lanes), lambda i: (i, 0))],
            out_specs=pl.BlockSpec((block_rows, lanes), lambda i: (i, 0)),
        ),
        # In-place on the 2D slab: no separate output HBM allocation.
        input_output_aliases={0: 0},
        compiler_params=pltpu.CompilerParams(
            dimension_semantics=("parallel",),      # shards across v7x's 2 TCs
            vmem_limit_bytes=32 * 1024 * 1024,      # 2 MiB tiles x 4 bufs << 32 MiB
        ),
    )(x2d)


@jax.jit
def simple_model_forward(x: jax.Array) -> jax.Array:
    """ReLU(x) as a Pallas TPU kernel. Works for any shape/dtype; preserves both."""
    orig_shape = x.shape
    n = x.size

    # Fallback (rare for NN tensors): flat size not a multiple of 128 lanes, or
    # empty. ReLU is trivially mem-bound; XLA is already at roofline here and a
    # pad/copy path around the kernel would only add HBM traffic.
    if n == 0 or n % 128 != 0:
        return jnp.maximum(x, jnp.zeros((), x.dtype))

    # Widest lane-dense last dim that divides the flat size (unmasked vst streams).
    lanes = 128
    for w in (1024, 512, 256):
        if n % w == 0:
            lanes = w
            break

    rows = n // lanes
    x2d = x.reshape(rows, lanes)

    # Tile sizing: ~2 MiB per tile, block_rows a multiple of the dtype's sublane
    # packing (f32:8, bf16:16, int8/fp8:32), or the full row extent for small inputs
    # (full-extent block dims are always legal w.r.t. the (8,128) constraint).
    itemsize = x.dtype.itemsize
    sublane = {4: 8, 2: 16, 1: 32}.get(itemsize, 8)
    target_tile_bytes = 2 * 1024 * 1024
    br = target_tile_bytes // (lanes * itemsize)
    br = max(sublane, (br // sublane) * sublane)
    block_rows = rows if br >= rows else br

    out2d = _relu_pallas_2d(x2d, block_rows)
    return out2d.reshape(orig_shape)


if __name__ == "__main__":
    key = jax.random.PRNGKey(0)
    # Small NCHW input consistent with a conv-style pipeline: batch=2, C=4, H=W=16
    x = jax.random.normal(key, (2, 4, 16, 16), dtype=jnp.float32)

    y = simple_model_forward(x)
    jax.block_until_ready(y)

    # Sanity check against the pure-JAX reference (torch.nn.ReLU semantics).
    y_ref = jnp.maximum(x, 0.0)
    assert y.shape == x.shape and y.dtype == x.dtype
    assert bool(jnp.allclose(y, y_ref)), "mismatch vs reference ReLU"

    print("KERNEL_OK")
</pallas_src>

<mosaic_0001>
module attributes {stable_mosaic.version = 11 : i64} {
  func.func @_relu_kernel(%arg0: i32, %arg1: memref<2x1024xf32, #tpu.memory_space<vmem>>, %arg2: memref<2x1024xf32, #tpu.memory_space<vmem>>) attributes {dimension_semantics = [#tpu.dimension_semantics<parallel>], iteration_bounds = array<i64: 1>, scalar_prefetch = 0 : i64, scratch_operands = 0 : i64, tpu.core_type = #tpu.core_type<tc>, window_params = [{transform_indices = @transform_0, window_bounds = array<i64: 2, 1024>}, {transform_indices = @transform_1, window_bounds = array<i64: 2, 1024>}]} {
    %c0 = arith.constant 0 : index
    %c0_0 = arith.constant 0 : index
    %0 = vector.load %arg1[%c0, %c0_0] : memref<2x1024xf32, #tpu.memory_space<vmem>>, vector<2x1024xf32>
    %cst = arith.constant 0.000000e+00 : f32
    %1 = vector.broadcast %cst : f32 to vector<2x1024xf32>
    %2 = arith.maximumf %0, %1 : vector<2x1024xf32>
    %c0_1 = arith.constant 0 : index
    %c0_2 = arith.constant 0 : index
    %3 = vector.load %arg2[%c0_1, %c0_2] : memref<2x1024xf32, #tpu.memory_space<vmem>>, vector<2x1024xf32>
    tpu.vector_store %arg2[%c0_1, %c0_2], %2 {strides = array<i32>} : memref<2x1024xf32, #tpu.memory_space<vmem>>, vector<2x1024xf32>,
    return
  }
  func.func @transform_0(%arg0: i32) -> (i32, i32) {
    %c0_i32 = arith.constant 0 : i32
    %c0_i32_0 = arith.constant 0 : i32
    return %arg0, %c0_i32 : i32, i32
  }
  func.func @transform_1(%arg0: i32) -> (i32, i32) {
    %c0_i32 = arith.constant 0 : i32
    %c0_i32_0 = arith.constant 0 : i32
    return %arg0, %c0_i32 : i32, i32
  }
}

</mosaic_0001>

<bundles_post_ra>
// kernel: simple_model_forward.1
= control target key start
LH: loop header
LB: loop body
LE: loop exit
PB: predicated region body
PF: predicated region fallthrough
CT: control target
= control target key end

     0   :  { %s40_s0 = inlined_call_operand.vmem [shape: f32[2,1024], index: 0, kind: input, shape index: {}, may-alias: {0,1}]   ;;  %s41_s1 = inlined_call_operand.vmem [shape: f32[2,1024], index: 1, kind: output, shape index: {}, may-alias: {0,1}]  }
   0x1   :  { %v8_v0 = vld [vmem:[%s40_s0] sm:$0xff]  ;;  %v9_v1 = vld [vmem:[%s40_s0 + $0x8] sm:$0xff] }
   0x2   :  { %v10_v2 = vmax.f32 %v8_v0, 0.0  ;;  %v11_v3 = vmax.f32 %v9_v1, 0.0 }
   0x4   :  { %12 = vst [vmem:[%s41_s1] sm:$0xff] %v10_v2  ;;  %13 = vst [vmem:[%s41_s1 + $0x8] sm:$0xff] %v11_v3 }

</bundles_post_ra>
